<compile_context>
chip_gen: v7x
topology: tpu7x:2x2x1
jax: 0.10.0
libtpu: 0.0.40
codegen_flags: <defaults>
</compile_context>

<pallas_src>
import functools

import numpy as np
import jax
import jax.numpy as jnp
from jax import lax
from jax.experimental import pallas as pl
from jax.experimental.pallas import tpu as pltpu

NEG_LARGE = -1e30  # finite stand-in for -inf (exp underflows to exactly 0)


def _round_up(x, m):
    return ((x + m - 1) // m) * m


def _sdpa_kernel(q_ref, k_ref, v_ref, *rest, scale, has_row_bias, has_col_bias):
    it = iter(rest)
    row_ref = next(it) if has_row_bias else None
    col_ref = next(it) if has_col_bias else None
    ctx_ref = next(it)
    attn_ref = next(it)

    q = q_ref[0]            # (TQ, Dp)   bf16
    k = k_ref[0]            # (Tkp, Dp)  bf16
    v = v_ref[0]            # (Tkp, Dvp) bf16

    # score = (Q @ K^T) * (1/sqrt(D)) -- bf16 operands, f32 accumulation on MXU.
    score = lax.dot_general(q, k, (((1,), (1,)), ((), ())),
                            preferred_element_type=jnp.float32) * scale  # (TQ, Tkp) f32

    # Additive bias masking (row = masked query rows, col = masked/padded keys).
    if has_row_bias:
        score = score + row_ref[0]          # (TQ, 1) broadcast
    if has_col_bias:
        score = score + col_ref[0]          # (1, Tkp) broadcast

    # Numerically stable softmax over the key axis.
    m = jnp.max(score, axis=-1, keepdims=True)
    p = jnp.exp(score - m)
    denom = jnp.sum(p, axis=-1, keepdims=True)
    inv = pl.reciprocal(denom, approx=True)         # EUP slot, essentially free
    attn = p * inv

    # Column-masked / padded entries are already exactly 0 (exp underflow);
    # only fully-masked query rows still need the explicit zero-fill.
    if has_row_bias:
        attn = jnp.where(row_ref[0] < 0.0, 0.0, attn)

    # context = attn @ V -- bf16 operands, f32 accumulation on MXU.
    ctx = jnp.dot(attn.astype(v.dtype), v, preferred_element_type=jnp.float32)

    ctx_ref[0] = ctx.astype(ctx_ref.dtype)
    attn_ref[0] = attn.astype(attn_ref.dtype)


def scaled_dot_product_attention(query, key, value, mask=None, *,
                                 q_tile=256, compute_dtype=jnp.bfloat16):
    """query: (B, Tq, D), key: (B, Tk, D), value: (B, Tk, Dv), mask: (B, Tk) bool.

    Returns (context (B, Tq, Dv), attn (B, Tq, Tk)) in `compute_dtype`.
    """
    B, Tq, D = query.shape
    Bk, Tk, Dk = key.shape
    Bv, Tkv, Dv = value.shape
    assert (Bk, Dk) == (B, D) and (Bv, Tkv) == (B, Tk)
    scale = 1.0 / float(np.sqrt(D))

    # bf16 data path: halves DMA bytes and runs the MXU at bf16 rate.
    q = query.astype(compute_dtype)
    k = key.astype(compute_dtype)
    v = value.astype(compute_dtype)

    # Lane-dense padding of the last dims to multiples of 128 (no-op if already).
    Dp = _round_up(D, 128)
    Dvp = _round_up(Dv, 128)
    Tkp = _round_up(Tk, 128)
    if Dp != D:
        q = jnp.pad(q, ((0, 0), (0, 0), (0, Dp - D)))
        k = jnp.pad(k, ((0, 0), (0, 0), (0, Dp - D)))
    if Tkp != Tk:
        k = jnp.pad(k, ((0, 0), (0, Tkp - Tk), (0, 0)))
        v = jnp.pad(v, ((0, 0), (0, Tkp - Tk), (0, 0)))
    if Dvp != Dv:
        v = jnp.pad(v, ((0, 0), (0, 0), (0, Dvp - Dv)))

    has_row = mask is not None
    has_col = (mask is not None) or (Tkp != Tk)

    # Query-sequence tiling: whole sequence if small, else q_tile-row tiles.
    if Tq <= q_tile:
        TQ = Tq
    else:
        assert Tq % q_tile == 0, "Tq must be a multiple of the query tile"
        TQ = q_tile
    nq = Tq // TQ
    grid = (B, nq)

    in_specs = [pl.BlockSpec((1, TQ, Dp), lambda b, qi: (b, qi, 0)),
                pl.BlockSpec((1, Tkp, Dp), lambda b, qi: (b, 0, 0)),    # resident over qi
                pl.BlockSpec((1, Tkp, Dvp), lambda b, qi: (b, 0, 0))]   # resident over qi
    inputs = [q, k, v]

    if has_row:
        # PyTorch views the (L, L) mask onto score.shape -> requires Tq == Tk.
        assert mask.shape == (B, Tk) and Tq == Tk
        row_bias = jnp.where(mask, NEG_LARGE, 0.0).astype(jnp.float32)[:, :, None]  # (B, Tq, 1)
        in_specs.append(pl.BlockSpec((1, TQ, 1), lambda b, qi: (b, qi, 0)))
        inputs.append(row_bias)
    if has_col:
        if mask is not None:
            colm = jnp.where(mask, NEG_LARGE, 0.0).astype(jnp.float32)  # (B, Tk)
        else:
            colm = jnp.zeros((B, Tk), jnp.float32)
        if Tkp != Tk:
            colm = jnp.pad(colm, ((0, 0), (0, Tkp - Tk)), constant_values=NEG_LARGE)
        col_bias = colm[:, None, :]                                      # (B, 1, Tkp)
        in_specs.append(pl.BlockSpec((1, 1, Tkp), lambda b, qi: (b, 0, 0)))
        inputs.append(col_bias)

    out_specs = (pl.BlockSpec((1, TQ, Dvp), lambda b, qi: (b, qi, 0)),
                 pl.BlockSpec((1, TQ, Tkp), lambda b, qi: (b, qi, 0)))
    out_shape = (jax.ShapeDtypeStruct((B, Tq, Dvp), compute_dtype),
                 jax.ShapeDtypeStruct((B, Tq, Tkp), compute_dtype))

    itemsize = jnp.dtype(compute_dtype).itemsize
    cost = pl.CostEstimate(
        flops=2 * B * Tq * Tkp * (Dp + Dvp),
        transcendentals=B * Tq * Tkp,
        bytes_accessed=itemsize * B * (Tq * Dp + Tkp * Dp + Tkp * Dvp
                                       + Tq * Dvp + Tq * Tkp))

    # Explicit VMEM budget: double-buffered blocks + f32 score/attn temps,
    # clamped to 64 MiB so it is valid on every generation (v7x physical = 64 MiB).
    blk_bytes = (2 * itemsize * (TQ * Dp + Tkp * Dp + Tkp * Dvp + TQ * Dvp + TQ * Tkp)
                 + 4 * 4 * TQ * Tkp)
    vmem_limit = int(min(max(2 * blk_bytes, 32 * 1024 * 1024), 64 * 1024 * 1024))

    kern = functools.partial(_sdpa_kernel, scale=scale,
                             has_row_bias=has_row, has_col_bias=has_col)
    ctx, attn = pl.pallas_call(
        kern,
        grid=grid,
        in_specs=in_specs,
        out_specs=out_specs,
        out_shape=out_shape,
        compiler_params=pltpu.CompilerParams(
            dimension_semantics=("parallel", "parallel"),
            vmem_limit_bytes=vmem_limit),
        cost_estimate=cost,
    )(*inputs)

    # Slice off the lane padding.
    if Dvp != Dv:
        ctx = ctx[:, :, :Dv]
    if Tkp != Tk:
        attn = attn[:, :, :Tk]
    return ctx, attn


def reference_sdpa(query, key, value, mask=None):
    """Pure-JAX f32 mirror of the PyTorch forward."""
    D = query.shape[-1]
    scale = 1.0 / np.sqrt(D)
    score = jnp.einsum("bqd,bkd->bqk", query, key,
                       precision=lax.Precision.HIGHEST) * scale
    if mask is not None:
        m2 = jnp.logical_or(mask[:, :, None], mask[:, None, :])
        score = jnp.where(m2, -jnp.inf, score)
    m = jnp.max(score, axis=-1, keepdims=True)
    p = jnp.exp(score - m)
    attn = p / jnp.sum(p, axis=-1, keepdims=True)
    if mask is not None:
        attn = jnp.where(m2, 0.0, attn)   # also clears NaNs of fully-masked rows
    ctx = jnp.einsum("bqk,bkv->bqv", attn, value,
                     precision=lax.Precision.HIGHEST)
    return ctx, attn


if __name__ == "__main__":
    B, T, D, Dv = 2, 8, 32, 32

    key0 = jax.random.PRNGKey(0)
    kq, kk, kv, km = jax.random.split(key0, 4)
    q = jax.random.normal(kq, (B, T, D), jnp.float32)
    k = jax.random.normal(kk, (B, T, D), jnp.float32)
    v = jax.random.normal(kv, (B, T, Dv), jnp.float32)
    mask = jax.random.bernoulli(km, 0.3, (B, T))   # True = position masked out

    # masked path
    ctx, attn = scaled_dot_product_attention(q, k, v, mask)
    ctx, attn = jax.block_until_ready((ctx, attn))
    ctx_ref, attn_ref = reference_sdpa(q, k, v, mask)
    np.testing.assert_allclose(np.asarray(attn).astype(np.float32),
                               np.asarray(attn_ref), rtol=3e-2, atol=3e-2)
    np.testing.assert_allclose(np.asarray(ctx).astype(np.float32),
                               np.asarray(ctx_ref), rtol=3e-2, atol=3e-2)

    # unmasked path
    ctx2, attn2 = scaled_dot_product_attention(q, k, v, None)
    ctx2, attn2 = jax.block_until_ready((ctx2, attn2))
    ctx2_ref, attn2_ref = reference_sdpa(q, k, v, None)
    np.testing.assert_allclose(np.asarray(attn2).astype(np.float32),
                               np.asarray(attn2_ref), rtol=3e-2, atol=3e-2)
    np.testing.assert_allclose(np.asarray(ctx2).astype(np.float32),
                               np.asarray(ctx2_ref), rtol=3e-2, atol=3e-2)

    print("KERNEL_OK")
</pallas_src>

<mosaic_0001>
module attributes {stable_mosaic.version = 11 : i64} {
  func.func @_sdpa_kernel(%arg0: i32, %arg1: i32, %arg2: memref<1x8x128xbf16, #tpu.memory_space<vmem>>, %arg3: memref<1x128x128xbf16, #tpu.memory_space<vmem>>, %arg4: memref<1x128x128xbf16, #tpu.memory_space<vmem>>, %arg5: memref<1x8x1xf32, #tpu.memory_space<vmem>>, %arg6: memref<1x1x128xf32, #tpu.memory_space<vmem>>, %arg7: memref<1x8x128xbf16, #tpu.memory_space<vmem>>, %arg8: memref<1x8x128xbf16, #tpu.memory_space<vmem>>) attributes {dimension_semantics = [#tpu.dimension_semantics<parallel>, #tpu.dimension_semantics<parallel>], iteration_bounds = array<i64: 2, 1>, scalar_prefetch = 0 : i64, scratch_operands = 0 : i64, tpu.core_type = #tpu.core_type<tc>, window_params = [{transform_indices = @transform_0, window_bounds = array<i64: 1, 8, 128>}, {transform_indices = @transform_1, window_bounds = array<i64: 1, 128, 128>}, {transform_indices = @transform_2, window_bounds = array<i64: 1, 128, 128>}, {transform_indices = @transform_3, window_bounds = array<i64: 1, 8, 1>}, {transform_indices = @transform_4, window_bounds = array<i64: 1, 1, 128>}, {transform_indices = @transform_5, window_bounds = array<i64: 1, 8, 128>}, {transform_indices = @transform_6, window_bounds = array<i64: 1, 8, 128>}]} {
    %c0 = arith.constant 0 : index
    %c0_0 = arith.constant 0 : index
    %c0_1 = arith.constant 0 : index
    %0 = vector.load %arg2[%c0, %c0_0, %c0_1] : memref<1x8x128xbf16, #tpu.memory_space<vmem>>, vector<1x8x128xbf16>
    %1 = vector.shape_cast %0 : vector<1x8x128xbf16> to vector<8x128xbf16>
    %c0_2 = arith.constant 0 : index
    %c0_3 = arith.constant 0 : index
    %c0_4 = arith.constant 0 : index
    %2 = vector.load %arg3[%c0_2, %c0_3, %c0_4] : memref<1x128x128xbf16, #tpu.memory_space<vmem>>, vector<1x128x128xbf16>
    %3 = vector.shape_cast %2 : vector<1x128x128xbf16> to vector<128x128xbf16>
    %c0_5 = arith.constant 0 : index
    %c0_6 = arith.constant 0 : index
    %c0_7 = arith.constant 0 : index
    %4 = vector.load %arg4[%c0_5, %c0_6, %c0_7] : memref<1x128x128xbf16, #tpu.memory_space<vmem>>, vector<1x128x128xbf16>
    %5 = vector.shape_cast %4 : vector<1x128x128xbf16> to vector<128x128xbf16>
    %cst = arith.constant dense<0.000000e+00> : vector<8x128xf32>
    %6 = tpu.matmul %1, %3, %cst {dimension_numbers = #tpu.dot_dimension_numbers<[1], [1], [0], [0], [0, 0, 1, 0], [], []>} : vector<8x128xbf16>, vector<128x128xbf16>, vector<8x128xf32> -> vector<8x128xf32>
    %cst_8 = arith.constant 0.176776692 : f32
    %7 = vector.broadcast %cst_8 : f32 to vector<8x128xf32>
    %8 = arith.mulf %6, %7 : vector<8x128xf32>
    %c0_9 = arith.constant 0 : index
    %c0_10 = arith.constant 0 : index
    %c0_11 = arith.constant 0 : index
    %9 = vector.load %arg5[%c0_9, %c0_10, %c0_11] : memref<1x8x1xf32, #tpu.memory_space<vmem>>, vector<1x8x1xf32>
    %10 = vector.shape_cast %9 : vector<1x8x1xf32> to vector<8x1xf32>
    %11 = vector.broadcast %10 : vector<8x1xf32> to vector<8x128xf32>
    %12 = arith.addf %8, %11 : vector<8x128xf32>
    %c0_12 = arith.constant 0 : index
    %c0_13 = arith.constant 0 : index
    %c0_14 = arith.constant 0 : index
    %13 = vector.load %arg6[%c0_12, %c0_13, %c0_14] : memref<1x1x128xf32, #tpu.memory_space<vmem>>, vector<1x1x128xf32>
    %14 = vector.shape_cast %13 : vector<1x1x128xf32> to vector<1x128xf32>
    %15 = vector.broadcast %14 : vector<1x128xf32> to vector<8x128xf32>
    %16 = arith.addf %12, %15 : vector<8x128xf32>
    %cst_15 = arith.constant dense<0xFF800000> : vector<8xf32>
    %17 = vector.multi_reduction <maximumf>, %16, %cst_15 [1] : vector<8x128xf32> to vector<8xf32>
    %18 = vector.shape_cast %17 : vector<8xf32> to vector<8x1xf32>
    %19 = vector.broadcast %18 : vector<8x1xf32> to vector<8x128xf32>
    %20 = arith.subf %16, %19 : vector<8x128xf32>
    %21 = math.exp %20 : vector<8x128xf32>
    %cst_16 = arith.constant dense<0.000000e+00> : vector<8xf32>
    %22 = vector.multi_reduction <add>, %21, %cst_16 [1] : vector<8x128xf32> to vector<8xf32>
    %23 = vector.shape_cast %22 : vector<8xf32> to vector<8x1xf32>
    %24 = tpu.reciprocal %23 {approx = true} : vector<8x1xf32> -> vector<8x1xf32>
    %25 = vector.broadcast %24 : vector<8x1xf32> to vector<8x128xf32>
    %26 = arith.mulf %21, %25 : vector<8x128xf32>
    %c0_17 = arith.constant 0 : index
    %c0_18 = arith.constant 0 : index
    %c0_19 = arith.constant 0 : index
    %27 = vector.load %arg5[%c0_17, %c0_18, %c0_19] : memref<1x8x1xf32, #tpu.memory_space<vmem>>, vector<1x8x1xf32>
    %28 = vector.shape_cast %27 : vector<1x8x1xf32> to vector<8x1xf32>
    %cst_20 = arith.constant 0.000000e+00 : f32
    %29 = vector.broadcast %cst_20 : f32 to vector<8x1xf32>
    %30 = arith.cmpf olt, %28, %29 : vector<8x1xf32>
    %cst_21 = arith.constant 0.000000e+00 : f32
    %31 = vector.shape_cast %30 : vector<8x1xi1> to vector<8x1xi1>
    %32 = vector.broadcast %31 : vector<8x1xi1> to vector<8x128xi1>
    %33 = vector.broadcast %cst_21 : f32 to vector<8x128xf32>
    %34 = arith.select %32, %33, %26 : vector<8x128xi1>, vector<8x128xf32>
    %35 = arith.truncf %34 : vector<8x128xf32> to vector<8x128xbf16>
    %cst_22 = arith.constant dense<0.000000e+00> : vector<8x128xf32>
    %36 = tpu.matmul %35, %5, %cst_22 {dimension_numbers = #tpu.dot_dimension_numbers<[1], [0], [0], [1], [0, 0, 1, 1], [], []>} : vector<8x128xbf16>, vector<128x128xbf16>, vector<8x128xf32> -> vector<8x128xf32>
    %37 = arith.truncf %36 : vector<8x128xf32> to vector<8x128xbf16>
    %c0_23 = arith.constant 0 : index
    %c0_24 = arith.constant 0 : index
    %c0_25 = arith.constant 0 : index
    %38 = vector.load %arg7[%c0_23, %c0_24, %c0_25] : memref<1x8x128xbf16, #tpu.memory_space<vmem>>, vector<1x8x128xbf16>
    %39 = vector.shape_cast %38 : vector<1x8x128xbf16> to vector<8x128xbf16>
    %40 = vector.shape_cast %37 : vector<8x128xbf16> to vector<1x8x128xbf16>
    tpu.vector_store %arg7[%c0_23, %c0_24, %c0_25], %40 {strides = array<i32>} : memref<1x8x128xbf16, #tpu.memory_space<vmem>>, vector<1x8x128xbf16>,
    %41 = arith.truncf %34 : vector<8x128xf32> to vector<8x128xbf16>
    %c0_26 = arith.constant 0 : index
    %c0_27 = arith.constant 0 : index
    %c0_28 = arith.constant 0 : index
    %42 = vector.load %arg8[%c0_26, %c0_27, %c0_28] : memref<1x8x128xbf16, #tpu.memory_space<vmem>>, vector<1x8x128xbf16>
    %43 = vector.shape_cast %42 : vector<1x8x128xbf16> to vector<8x128xbf16>
    %44 = vector.shape_cast %41 : vector<8x128xbf16> to vector<1x8x128xbf16>
    tpu.vector_store %arg8[%c0_26, %c0_27, %c0_28], %44 {strides = array<i32>} : memref<1x8x128xbf16, #tpu.memory_space<vmem>>, vector<1x8x128xbf16>,
    return
  }
  func.func @transform_0(%arg0: i32, %arg1: i32) -> (i32, i32, i32) {
    %c0_i32 = arith.constant 0 : i32
    %c0_i32_0 = arith.constant 0 : i32
    return %arg0, %arg1, %c0_i32 : i32, i32, i32
  }
  func.func @transform_1(%arg0: i32, %arg1: i32) -> (i32, i32, i32) {
    %c0_i32 = arith.constant 0 : i32
    %c0_i32_0 = arith.constant 0 : i32
    %c0_i32_1 = arith.constant 0 : i32
    return %arg0, %c0_i32, %c0_i32_0 : i32, i32, i32
  }
  func.func @transform_2(%arg0: i32, %arg1: i32) -> (i32, i32, i32) {
    %c0_i32 = arith.constant 0 : i32
    %c0_i32_0 = arith.constant 0 : i32
    %c0_i32_1 = arith.constant 0 : i32
    return %arg0, %c0_i32, %c0_i32_0 : i32, i32, i32
  }
  func.func @transform_3(%arg0: i32, %arg1: i32) -> (i32, i32, i32) {
    %c0_i32 = arith.constant 0 : i32
    %c0_i32_0 = arith.constant 0 : i32
    return %arg0, %arg1, %c0_i32 : i32, i32, i32
  }
  func.func @transform_4(%arg0: i32, %arg1: i32) -> (i32, i32, i32) {
    %c0_i32 = arith.constant 0 : i32
    %c0_i32_0 = arith.constant 0 : i32
    %c0_i32_1 = arith.constant 0 : i32
    return %arg0, %c0_i32, %c0_i32_0 : i32, i32, i32
  }
  func.func @transform_5(%arg0: i32, %arg1: i32) -> (i32, i32, i32) {
    %c0_i32 = arith.constant 0 : i32
    %c0_i32_0 = arith.constant 0 : i32
    return %arg0, %arg1, %c0_i32 : i32, i32, i32
  }
  func.func @transform_6(%arg0: i32, %arg1: i32) -> (i32, i32, i32) {
    %c0_i32 = arith.constant 0 : i32
    %c0_i32_0 = arith.constant 0 : i32
    return %arg0, %arg1, %c0_i32 : i32, i32, i32
  }
}

</mosaic_0001>

<bundles_post_ra>
// kernel: tpu_custom_call.1
= control target key start
LH: loop header
LB: loop body
LE: loop exit
PB: predicated region body
PF: predicated region fallthrough
CT: control target
= control target key end

     0   :  { %s1612_s0 = inlined_call_operand.vmem [shape: bf16[2,8,128], index: 0, kind: input, shape index: {}]   ;;  %s1613_s1 = inlined_call_operand.hbm [shape: bf16[2,128,128], index: 1, kind: input, shape index: {}]   ;;  %s1614_s2 = inlined_call_operand.hbm [shape: bf16[2,128,128], index: 2, kind: input, shape index: {}]   ;;  %s1615_s3 = inlined_call_operand.vmem [shape: f32[2,8,1], index: 3, kind: input, shape index: {}]   ;;  %s1616_s4 = inlined_call_operand.vmem [shape: f32[2,1,128], index: 4, kind: input, shape index: {}]   ;;  %s1617_s5 = inlined_call_operand.hbm [shape: bf16[2,8,128], index: 5, kind: output, shape index: {0}]   ;;  %s1618_s6 = inlined_call_operand.hbm [shape: bf16[2,8,128], index: 6, kind: output, shape index: {1}]  }
   0x1   :  { %1624 = sst [smem:[#allocation15_spill]] %s1613_s1 }
   0x2   :  { %12 = vsyncpa [#allocation3], 0 }
   0x3   :  { %14 = vsyncpa [#allocation3 + $0x1], 0 }
   0x4   :  { %15 = vsyncpa [#allocation6], 0 }
   0x5   :  { %17 = vsyncpa [#allocation6 + $0x1], 0 }
   0x6   :  { %18 = vsyncpa [#allocation4], 0 }
   0x7   :  { %20 = vsyncpa [#allocation4 + $0x1], 0 }
   0x8   :  { %21 = vsyncpa [#allocation9], 0 }
   0x9   :  { %23 = vsyncpa [#allocation9 + $0x1], 0  ;;  %s1289_s21 = smov 0   ;;  %s1291_s22 = smov 0  }
   0xa   :  { %s1293_s23 = smov 0   ;;  %s1295_s24 = smov 0  }
   0xb   :  { %s1297_s25 = smov 0   ;;  %s1299_s26 = smov 0  }
   0xc LB: > { %s861_s27 = sadd.s32 4294967295, %s1243_s26   ;;  %s862_s28 = sadd.s32 4294967294, %s1243_s26   ;;  %s1243_s26 = sphi %s1299_s26, %s29_s26   ;;  %s1239_s25 = sphi %s1297_s25, %s1645_s25   ;;  %s1235_s24 = sphi %s1295_s24, %s1644_s24   ;;  %s1231_s23 = sphi %s1293_s23, %s1643_s23   ;;  %s1227_s22 = sphi %s1291_s22, %s1642_s22   ;;  %s1223_s21 = sphi %s1289_s21, %s1641_s21  }
   0xd   : > { %s41_s29 = sadd.s32 1, %s1239_s25  ;;  %s76_s30 = sadd.s32 1, %s1231_s23 }
   0xe   : > { %p43_p0 = scmp.ge.s32.totalorder %s41_s29, 2  ;;  %p83_p1 = scmp.ne.s32.totalorder %s1231_s23, %s1227_s22 }
   0xf   : > { %p84_p2 = scmp.eq.s32.totalorder %s1243_s26, 0  ;;  %p89_p3 = scmp.ne.s32.totalorder %s1227_s22, %s1223_s21 }
  0x10   : > { %s1647_s29 = smov (%p43_p0, %s41_s29), 0  ;;  %p90_p5 = scmp.eq.s32.totalorder %s861_s27, 0 }
  0x11   : > { %1625 = sst [smem:[#allocation14_spill]] %s1647_s29  ;;  %p1330_p4 = por %p84_p2, %p83_p1 }
  0x12   : > { %s73_s8 = ssub.s32 %s1239_s25, %s1647_s29  ;;  %p195_p6 = scmp.eq.s32.totalorder %s861_s27, 1 }
  0x13   : > { %p74_p7 = scmp.eq.s32.totalorder %s73_s8, 0  ;;  %p1336_p8 = por %p90_p5, %p89_p3 }
  0x14   : > { %p1340_p9 = por %p195_p6, %p83_p1  ;;  %p201_p10 = scmp.eq.s32.totalorder %s862_s28, 1 }
  0x15   : > { %s1627_s9 = scalar_select %p1336_p8, 1, 0 }
  0x16   : > { %s1628_s10 = scalar_select %p1340_p9, 1, 0 }
  0x17   : > { %s1345_s11 = scalar_select %p74_p7, %s1231_s23, %s76_s30  }
  0x18   : > { %p1347_p11 = por %p201_p10, %p89_p3  ;;  %p988_p13 = scmp.lt.s32.totalorder %s1243_s26, 2 }
  0x19   : > { %s1354_s13 = sand.u32 1, %s1231_s23   ;;  %s906_s15 = sshll.u32 %s1239_s25, 10 }
  0x1a   : > { %s1629_s12 = scalar_select %p1347_p11, 1, 0 }
  0x1b   : > { %s1619_s14 = sshll.u32 %s1354_s13, 6  ;;  %s1630_s1 = sld [smem:[#allocation15_spill]] }
  0x1c   : > { %s263_s19 = scalar_lea.vmem [#allocation2], %s1619_s14  ;;  %p1371_p0 = pnand %p988_p13, %p1330_p4 }
  0x1d   : > { %s270_s20 = sshll.u32 %s263_s19, 4  ;;  %s260_s28 = scalar_lea.sflag [#allocation3], %s1354_s13  ;;  %s1367_s20 = int_to_ptr.vmem [resolvable:$true] %s270_s20 }
  0x1e   : > { %p1067_p3 = pneg %p1371_p0 }
  0x21   : > { %s1363_s18 = scalar_lea.hbm %s1630_s1, %s906_s15  ;;  %s1070_s7 = scalar_lea.hbm %s1630_s1, 2048 }
  0x22   : > { %s1065_s30 = scalar_lea.hbm %s1363_s18, 1024  ;;  %p1071_p4 = scmp.lt.u32.totalorder %s1363_s18, %s1630_s1 }
  0x23   : > { %p1066_p2 = scmp.ne.s32.totalorder %s1363_s18, %s1065_s30  ;;  %p1072_p7 = scmp.lt.u32.totalorder %s1070_s7, %s1065_s30 }
  0x24   : > { %p1074_p13 = scmp.lt.u32.totalorder %s1065_s30, %s1363_s18 }
  0x25   : > { %p1068_p5 = pnand %p1067_p3, %p1066_p2  ;;  %p1073_p10 = por %p1072_p7, %p1071_p4 }
  0x27   : > { %p1069_p6 = pneg %p1068_p5  ;;  %p1075_p12 = por %p1074_p13, %p1073_p10 }
  0x29   : > { %p1076_p1 = pnand %p1075_p12, %p1069_p6 }
  0x2b   : > { %1079 = shalt.err (!%p1076_p1)
}
  0x2c   : > { %s1080_s14 = scalar_lea.vmem %s1367_s20, 1024  ;;  %s1245_s8 = smov [#allocation2]  }
  0x2d   : > { %p1081_p2 = scmp.ne.s32.totalorder %s1367_s20, %s1080_s14  ;;  %s1085_s16 = sshll.u32 %s1245_s8, 4  ;;  %s1086_s16 = int_to_ptr.vmem [resolvable:$false] %s1085_s16 }
  0x2e   : > { %s1087_s17 = scalar_lea.vmem %s1086_s16, 2048  ;;  %p1088_p9 = scmp.lt.s32.totalorder %s1367_s20, %s1086_s16 }
  0x2f   : > { %p1083_p5 = pnand %p1081_p2, %p1067_p3  ;;  %p1089_p4 = scmp.lt.s32.totalorder %s1087_s17, %s1080_s14 }
  0x31   : > { %p1084_p11 = pneg %p1083_p5  ;;  %p1090_p7 = por %p1089_p4, %p1088_p9 }
  0x33   : > { %p1091_p10 = pnand %p1090_p7, %p1084_p11 }
  0x35   : > { %1094 = shalt.err (!%p1091_p10)
}
  0x36   : > { %s1622_s30 = smov 64   ;;  %s1247_s7 = smov 4  }
  0x37   : > { %977 = dma.hbm_to_vmem [thread:$0]  (!%p1371_p0), %s1363_s18, 1024, %s1367_s20, %s260_s28, %s1622_s30, %s1622_s30, %s1247_s7  }
  0x38   : > { %p315_p9 = scmp.lt.s32.totalorder %s1243_s26, 3  ;;  %s1413_s8 = scalar_lea.hbm %s1614_s2, %s906_s15 }
  0x39   : > { %p1632_p11 = scmp.ge.s32.totalorder %s1243_s26, 1  ;;  %s1634_s17 = sshll.u32 %s1354_s13, 6 }
  0x3a   : > { %s284_s1 = scalar_lea.vmem [#allocation5], %s1634_s17  ;;  %s281_s18 = scalar_lea.sflag [#allocation6], %s1354_s13 }
  0x3b   : > { %p1417_p12 = pnand %p1632_p11, %p315_p9  ;;  %s291_s29 = sshll.u32 %s284_s1, 4  ;;  %s1423_s29 = int_to_ptr.vmem [resolvable:$true] %s291_s29 }
  0x3c   : > { %s1095_s20 = scalar_lea.hbm %s1413_s8, 1024  ;;  %s1100_s14 = scalar_lea.hbm %s1614_s2, 2048 }
  0x3d   : > { %p1096_p1 = scmp.ne.s32.totalorder %s1413_s8, %s1095_s20  ;;  %p1101_p2 = scmp.lt.u32.totalorder %s1413_s8, %s1614_s2 }
  0x3e   : > { %p1102_p5 = scmp.lt.u32.totalorder %s1100_s14, %s1095_s20  ;;  %p1104_p7 = scmp.lt.u32.totalorder %s1095_s20, %s1413_s8 }
  0x3f   : > { %p1098_p6 = pnand %p1096_p1, %p1067_p3 }
  0x40   : > { %p1103_p4 = por %p1102_p5, %p1101_p2 }
  0x41   : > { %p1099_p13 = pneg %p1098_p6 }
  0x42   : > { %p1105_p10 = por %p1104_p7, %p1103_p4 }
  0x44   : > { %p1106_p9 = pnand %p1105_p10, %p1099_p13 }
  0x46   : > { %1109 = shalt.err (!%p1106_p9)
}
  0x47   : > { %s1110_s1 = scalar_lea.vmem %s1423_s29, 1024  ;;  %s1248_s17 = smov [#allocation5]  }
  0x48   : > { %p1111_p11 = scmp.ne.s32.totalorder %s1423_s29, %s1110_s1  ;;  %s1115_s15 = sshll.u32 %s1248_s17, 4  ;;  %s1116_s15 = int_to_ptr.vmem [resolvable:$false] %s1115_s15 }
  0x49   : > { %s1117_s30 = scalar_lea.vmem %s1116_s15, 2048  ;;  %p1118_p8 = scmp.lt.s32.totalorder %s1423_s29, %s1116_s15 }
  0x4a   : > { %p1113_p1 = pnand %p1111_p11, %p1067_p3  ;;  %p1119_p2 = scmp.lt.s32.totalorder %s1117_s30, %s1110_s1 }
  0x4c   : > { %p1114_p6 = pneg %p1113_p1  ;;  %p1120_p5 = por %p1119_p2, %p1118_p8 }
  0x4e   : > { %p1121_p4 = pnand %p1120_p5, %p1114_p6 }
  0x50   : > { %1124 = shalt.err (!%p1121_p4)
}
  0x51   : > { %s1635_s20 = smov 64   ;;  %319 = sbr.rel (%p1417_p12) target bundleno = 918 (0x396), region = 40 }
  0x52   : > { %980 = dma.hbm_to_vmem [thread:$0]  (!%p1371_p0), %s1413_s8, 1024, %s1423_s29, %s281_s18, %s1635_s20, %s1635_s20, %s1247_s7  }
  0x53   : > { %s1457_s28 = sand.u32 (!%p1417_p12), 1, %s1227_s22   ;;  %p1636_p8 = scmp.ne.s32.totalorder (!%p1417_p12), %s1627_s9, 0 }
  0x54   : > { %s872_s14 = sshll.u32 (!%p1417_p12), %s1457_s28, 6  ;;  %s322_s19 = scalar_lea.sflag (!%p1417_p12), [#allocation3], %s1457_s28 }
  0x55   : > { %s1461_s27 = scalar_lea.vmem (!%p1417_p12), [#allocation2], %s872_s14 }
  0x58   : > { %1206 = dma.done.wait (%p1636_p8), %s322_s19, 1024  }
  0x59   : > { %1208 = vsyncadd (%p1636_p8), %s322_s19, 4294966272  ;;  %s331_s29 = scalar_lea.sflag [#allocation6], %s1457_s28  ;;  %s1468_s13 = scalar_lea.vmem [#allocation5], %s872_s14 }
  0x5a   : > { %1210 = dma.done.wait (%p1636_p8), %s331_s29, 1024  }
  0x5b   : > { %1212 = vsyncadd (%p1636_p8), %s331_s29, 4294966272  ;;  %v1249_v0 = vmov 0.0   ;;  %vm1250_vm0 = vmmov 0   ;;  %v1251_v1 = vmov 0   ;;  %p390_p0 = scmp.lt.s32.totalorder %s1235_s24, 1  ;;  %v1045_v2 = vld [vmem:[%s1461_s27] sm:$0xff]  }
  0x5c   : > { %926 = vmatprep.subr.bf16.mxu0 %v1249_v0  ;;  %942 = vmatprep.mubr.msk.bf16.mxu0 %vm1250_vm0, %v1249_v0  ;;  %v1046_v3 = vld [vmem:[%s1461_s27 + $0x8] sm:$0xff]   ;;  %v1047_v5 = vld [vmem:[%s1461_s27 + $0x10] sm:$0xff]   ;;  %v1048_v6 = vld [vmem:[%s1461_s27 + $0x18] sm:$0xff]   ;;  %p1637_p12 = scmp.ne.s32.totalorder %s1628_s10, 0  ;;  %s1252_s17 = smov [#allocation8]  }
  0x5d   : > { %1043 = vset.pattern.permute.xlu0 %v1251_v1  ;;  %1044 = vset.pattern.permute.xlu1 %v1251_v1  ;;  %s1483_s9 = scalar_select %p390_p0, %s1235_s24, 1  ;;  %v1049_v7 = vld [vmem:[%s1461_s27 + $0x20] sm:$0xff]   ;;  %v1050_v8 = vld [vmem:[%s1461_s27 + $0x28] sm:$0xff]   ;;  %v1051_v9 = vld [vmem:[%s1461_s27 + $0x30] sm:$0xff]  }
  0x5e   : > { %946 = vmatprep.subr.bf16.mxu1 %v1249_v0  ;;  %962 = vmatprep.mubr.msk.bf16.mxu1 %vm1250_vm0, %v1249_v0  ;;  %v1052_v10 = vld [vmem:[%s1461_s27 + $0x38] sm:$0xff]   ;;  %v1053_v21 = vld [vmem:[%s1468_s13] sm:$0xff]   ;;  %v1054_v22 = vld [vmem:[%s1468_s13 + $0x8] sm:$0xff]   ;;  %s874_s27 = sshll.u32 %s1457_s28, 2  ;;  %s1129_s15 = sshll.u32 %s1252_s17, 4  ;;  %s1130_s15 = int_to_ptr.vmem [resolvable:$false] %s1129_s15 }
  0x5f   : > { %927 = vmatpush3.bf16.xpose.msra.mxu0 %v1045_v2  ;;  %s877_s7 = sshll.u32 %s1483_s9, 3  ;;  %s876_s1 = sshll.u32 %s1483_s9, 2  ;;  %947 = vmatpush3.bf16.msra.mxu1 %v1053_v21  ;;  %v1055_v23 = vld [vmem:[%s1468_s13 + $0x10] sm:$0xff]   ;;  %v1056_v24 = vld [vmem:[%s1468_s13 + $0x18] sm:$0xff]   ;;  %v1057_v29 = vld [vmem:[%s1468_s13 + $0x20] sm:$0xff]  }
  0x60   : > { %928 = vmatprep.subr.bf16.mxu0 %v1249_v0  ;;  %s403_s18 = scalar_lea.vmem %s1615_s3, %s877_s7  ;;  %s396_s30 = scalar_lea.vmem %s1612_s0, %s876_s1  ;;  %948 = vmatprep.subr.bf16.mxu1 %v1249_v0  ;;  %v1058_v31 = vld [vmem:[%s1468_s13 + $0x28] sm:$0xff]   ;;  %v1059_v32 = vld [vmem:[%s1468_s13 + $0x30] sm:$0xff]   ;;  %v1060_v33 = vld [vmem:[%s1468_s13 + $0x38] sm:$0xff]  }
  0x61   : > { %v530_v4 = vld [vmem:[%s403_s18] sm:$0xff]  ;;  %s406_s19 = scalar_lea.vmem %s1616_s4, %s1483_s9  ;;  %s389_s29 = scalar_lea.vmem [#allocation8], %s874_s27 }
  0x62   : > { %533 = vperm.xlu0 %1043, %v530_v4   ;;  %v408_v11 = vld [vmem:[%s396_s30] sm:$0xf]  ;;  %vm554_vm1 = vcmp.lt.f32.partialorder %v530_v4, 0.0  ;;  %s902_s13 = sshll.u32 %s1235_s24, 6  ;;  %s687_s16 = sshll.u32 %s389_s29, 4  ;;  %s688_s16 = int_to_ptr.vmem [resolvable:$true] %s687_s16 }
  0x63   : > { %v886_v17 = vld [vmem:[%s406_s19] ss:$0 sm:$0xff]  ;;  %949 = vmatpush3.bf16.msra.mxu1 %v1054_v22  ;;  %v555_v30 = vsel %vm554_vm1, 1, %v1251_v1  ;;  %s1536_s8 = scalar_lea.hbm %s1618_s6, %s902_s13  ;;  %s659_s18 = scalar_lea.sflag [#allocation9], %s1457_s28 }
  0x64   : > { %950 = vmatprep.subr.bf16.mxu1 %v1249_v0  ;;  %s1125_s1 = scalar_lea.vmem %s688_s16, 64  ;;  %s1131_s30 = scalar_lea.vmem %s1130_s15, 128 }
  0x65   : > { %p1126_p3 = scmp.ne.s32.totalorder %s688_s16, %s1125_s1  ;;  %p1132_p10 = scmp.lt.s32.totalorder %s688_s16, %s1130_s15 }
  0x66   : > { %p1133_p9 = scmp.lt.s32.totalorder %s1131_s30, %s1125_s1 }
  0x67   : > { %929 = vmatpush3.bf16.xpose.msra.mxu0 %v1046_v3  ;;  %951 = vmatpush3.bf16.msra.mxu1 %v1055_v23  ;;  %p1127_p13 = pnand %p1126_p3, %p1637_p12 }
  0x68   : > { %930 = vmatprep.subr.bf16.mxu0 %v1249_v0  ;;  %952 = vmatprep.subr.bf16.mxu1 %v1249_v0  ;;  %p1134_p11 = por %p1133_p9, %p1132_p10 }
  0x69   : > { %p1128_p7 = pneg %p1127_p13 }
  0x6b   : > { %953 = vmatpush3.bf16.msra.mxu1 %v1056_v24  ;;  %p1135_p1 = pnand %p1134_p11, %p1128_p7 }
  0x6c   : > { %954 = vmatprep.subr.bf16.mxu1 %v1249_v0 }
  0x6f   : > { %931 = vmatpush3.bf16.xpose.msra.mxu0 %v1047_v5  ;;  %955 = vmatpush3.bf16.msra.mxu1 %v1057_v29 }
  0x70   : > { %932 = vmatprep.subr.bf16.mxu0 %v1249_v0  ;;  %956 = vmatprep.subr.bf16.mxu1 %v1249_v0 }
  0x73   : > { %957 = vmatpush3.bf16.msra.mxu1 %v1058_v31 }
  0x74   : > { %958 = vmatprep.subr.bf16.mxu1 %v1249_v0 }
  0x77   : > { %933 = vmatpush3.bf16.xpose.msra.mxu0 %v1048_v6  ;;  %959 = vmatpush3.bf16.msra.mxu1 %v1059_v32 }
  0x78   : > { %934 = vmatprep.subr.bf16.mxu0 %v1249_v0  ;;  %960 = vmatprep.subr.bf16.mxu1 %v1249_v0 }
  0x7b   : > { %961 = vmatpush3.bf16.msra.mxu1 %v1060_v33 }
  0x7f   : > { %935 = vmatpush3.bf16.xpose.msra.mxu0 %v1049_v7 }
  0x80   : > { %936 = vmatprep.subr.bf16.mxu0 %v1249_v0 }
  0x87   : > { %937 = vmatpush3.bf16.xpose.msra.mxu0 %v1050_v8 }
  0x88   : > { %938 = vmatprep.subr.bf16.mxu0 %v1249_v0 }
  0x8f   : > { %939 = vmatpush3.bf16.xpose.msra.mxu0 %v1051_v9 }
  0x90   : > { %940 = vmatprep.subr.bf16.mxu0 %v1249_v0 }
  0x97   : > { %941 = vmatpush3.bf16.xpose.msra.mxu0 %v1052_v10 }
  0x9e   : > { %943 = vmatmul.mubr.bf16.vlgmr.msra.gmra.mrb[0].mxu0 %v408_v11 }
  0xe1   : > { %v534_v13 = vpop.permute.xlu0 %533 }
 0x171   : > { %v523_v12 = vpop.f32.mrb[0].mxu0 }
 0x172   : > { %v529_v14 = vmul.f32 0.17677669, %v523_v12  ;;  %v944_v15 = vpop.f32.mrb[1].mxu0 }
 0x173   : > { %v526_v16 = vpop.f32.mrb[2].mxu0 }
 0x174   : > { %v536_v18 = vadd.f32 %v534_v13, %v529_v14  ;;  %v945_v19 = vpop.f32.mrb[3].mxu0 }
 0x176   : > { %v544_v20 = vadd.f32 %v886_v17, %v536_v18 }
 0x178   : > { %545 = vmax.xlane.f32.xlu0 %v544_v20 }
 0x205   : > { %v546_v25 = vpop.xlane.xlu0 %545 }
 0x206   : > { %v547_v26 = vsub.f32 %v544_v20, %v546_v25 }
 0x208   : > { %v548_v27 = vmul.f32 1.442695, %v547_v26 }
 0x20a   : > { %1061 = vpow2.f32 %v548_v27 }
 0x214   : > { %v1062_v28 = vpop.eup %1061 }
 0x215   : > { %550 = vadd.xlane.f32.xlu1 %v1062_v28 }
 0x226   : > { %557 = vperm.xlu1 %1044, %v555_v30  }
 0x2a2   : > { %v551_v34 = vpop.xlane.xlu1 %550 }
 0x2a3   : > { %1063 = vrcp.f32 %v551_v34 }
 0x2a6   : > { %v558_v35 = vpop.permute.xlu1 %557 }
 0x2a7   : > { %vm559_vm2 = vcmp.eq.s32.totalorder %v558_v35, 1 }
 0x2a8   : > { %vm895_vm3 = vmneg %vm559_vm2 }
 0x2a9   : > { %vm897_vm4 = vmpackc.low %vm895_vm3, %vm895_vm3 }
 0x2ad   : > { %v1064_v36 = vpop.eup %1063 }
 0x2ae   : > { %v553_v37 = vmul.f32 %v1064_v36, %v1062_v28 }
 0x2b0   : > { %v898_v38 = vpack.c.bf16 %v553_v37, %v553_v37  ;;  %v560_v39 = vsel %vm559_vm2, 0.0, %v553_v37 }
 0x2b1   : > { %v561_v40 = vpack.c.bf16 %v560_v39, %v560_v39 }
 0x2b2   : > { %963 = vmatmul.mubr.msk.bf16.vlgmr.msra.gmra.mrb[0].mxu1 %vm897_vm4, %v898_v38 }
 0x2b3   : > { %652 = vst [vmem:[%s389_s29] sm:$0xf] %v561_v40 }
 0x2b4   : > { %1138 = shalt.err (!%p1135_p1)
}
 0x2b5   : > { %s1139_s20 = scalar_lea.hbm %s1536_s8, 64  ;;  %s1143_s29 = scalar_lea.hbm %s1618_s6, 128 }
 0x2b6   : > { %p1140_p6 = scmp.ne.s32.totalorder %s1536_s8, %s1139_s20  ;;  %p1144_p4 = scmp.lt.u32.totalorder %s1536_s8, %s1618_s6 }
 0x2b7   : > { %p1145_p8 = scmp.lt.u32.totalorder %s1143_s29, %s1139_s20  ;;  %p1147_p3 = scmp.lt.u32.totalorder %s1139_s20, %s1536_s8 }
 0x2b8   : > { %p1141_p2 = pnand %p1140_p6, %p1637_p12 }
 0x2b9   : > { %p1146_p0 = por %p1145_p8, %p1144_p4 }
 0x2ba   : > { %p1142_p5 = pneg %p1141_p2 }
 0x2bb   : > { %p1148_p13 = por %p1147_p3, %p1146_p0 }
 0x2bd   : > { %p1149_p7 = pnand %p1148_p13, %p1142_p5 }
 0x2bf   : > { %1152 = shalt.err (!%p1149_p7)
}
 0x2c0   : > { %971 = dma.vmem_to_hbm [thread:$0]  (%p1637_p12), %s688_s16, 64, %s1536_s8, %s659_s18  }
 0x2c1   : > { %s382_s1 = scalar_lea.vmem [#allocation7], %s874_s27  ;;  %s1563_s20 = scalar_lea.hbm %s1617_s5, %s902_s13 }
 0x2c2   : > { %s673_s17 = sshll.u32 %s382_s1, 4  ;;  %s654_s8 = scalar_lea.sflag [#allocation4], %s1457_s28  ;;  %s1565_s17 = int_to_ptr.vmem [resolvable:$true] %s673_s17 }
 0x2c3   : > { %s1153_s27 = scalar_lea.vmem %s1565_s17, 64  ;;  %s1253_s24 = smov [#allocation7]  }
 0x2c4   : > { %p1154_p10 = scmp.ne.s32.totalorder %s1565_s17, %s1153_s27  ;;  %s1157_s16 = sshll.u32 %s1253_s24, 4  ;;  %s1158_s16 = int_to_ptr.vmem [resolvable:$false] %s1157_s16 }
 0x2c5   : > { %s1159_s18 = scalar_lea.vmem %s1158_s16, 128  ;;  %p1160_p1 = scmp.lt.s32.totalorder %s1565_s17, %s1158_s16 }
 0x2c6   : > { %p1155_p9 = pnand %p1154_p10, %p1637_p12  ;;  %p1161_p6 = scmp.lt.s32.totalorder %s1159_s18, %s1153_s27 }
 0x2c8   : > { %p1156_p11 = pneg %p1155_p9  ;;  %p1162_p2 = por %p1161_p6, %p1160_p1 }
 0x2ca   : > { %p1163_p5 = pnand %p1162_p2, %p1156_p11 }
 0x385   : > { %v644_v41 = vpop.f32.mrb[0].mxu1 }
 0x386   : > { %v650_v42 = vpack.c.bf16 %v644_v41, %v644_v41  ;;  %v964_v43 = vpop.f32.mrb[1].mxu1 }
 0x387   : > { %v647_v44 = vpop.f32.mrb[2].mxu1 }
 0x388   : > { %651 = vst [vmem:[%s382_s1] sm:$0xf] %v650_v42  ;;  %v965_v45 = vpop.f32.mrb[3].mxu1 }
 0x389   : > { %1166 = shalt.err (!%p1163_p5)
}
 0x38a   : > { %s1167_s28 = scalar_lea.hbm %s1563_s20, 64  ;;  %s1171_s19 = scalar_lea.hbm %s1617_s5, 128 }
 0x38b   : > { %p1168_p4 = scmp.ne.s32.totalorder %s1563_s20, %s1167_s28  ;;  %p1172_p3 = scmp.lt.u32.totalorder %s1563_s20, %s1617_s5 }
 0x38c   : > { %p1173_p13 = scmp.lt.u32.totalorder %s1171_s19, %s1167_s28  ;;  %p1175_p10 = scmp.lt.u32.totalorder %s1167_s28, %s1563_s20 }
 0x38d   : > { %p1169_p8 = pnand %p1168_p4, %p1637_p12 }
 0x38e   : > { %p1174_p7 = por %p1173_p13, %p1172_p3 }
 0x38f   : > { %p1170_p0 = pneg %p1169_p8 }
 0x390   : > { %p1176_p9 = por %p1175_p10, %p1174_p7 }
 0x392   : > { %p1177_p11 = pnand %p1176_p9, %p1170_p0 }
 0x394   : > { %1180 = shalt.err (!%p1177_p11)
}
 0x395   : > { %970 = dma.vmem_to_hbm [thread:$0]  (%p1637_p12), %s1565_s17, 64, %s1563_s20, %s654_s8  }
 0x396 PF: > { %s699_s7 = sand.u32 1, %s1223_s21   ;;  %p1638_p1 = scmp.ne.s32.totalorder %s1629_s12, 0 }
 0x397   : > { %p1639_p6 = scmp.ge.s32.totalorder %s1243_s26, 2  ;;  %s700_s1 = scalar_lea.sflag [#allocation4], %s699_s7 }
 0x399   : > { %p982_p2 = pnand %p1639_p6, %p1638_p1 }
 0x39b   : > { %1214 = dma.done.wait (!%p982_p2), %s700_s1, 64  }
 0x39c   : > { %1216 = vsyncadd (!%p982_p2), %s700_s1, 4294967232  ;;  %s709_s15 = scalar_lea.sflag [#allocation9], %s699_s7 }
 0x39d   : > { %1218 = dma.done.wait (!%p982_p2), %s709_s15, 64  }
 0x39e   : > { %1220 = vsyncadd (!%p982_p2), %s709_s15, 4294967232  ;;  %s29_s26 = sadd.s32 1, %s1243_s26   ;;  %s1640_s10 = sld [smem:[#allocation14_spill]] }
 0x39f   : > { %p26_p5 = scmp.ge.s32.totalorder %s29_s26, 4   ;;  %s1641_s21 = smov %s1227_s22 }
 0x3a0   : > { %s1642_s22 = smov %s1231_s23  ;;  %s1643_s23 = smov %s1345_s11 }
 0x3a1   : > { %s1644_s24 = smov %s1239_s25  ;;  %28 = sbr.rel (!%p26_p5) target bundleno = 12 (0xc), region = 124 }
 0x3a4   : > { %s1645_s25 = smov %s1640_s10 }
 0x3a8   :  { %714 = vsyncpa [#allocation3], 1 }
 0x3a9   :  { %716 = vsyncpa [#allocation3 + $0x1], 1 }
 0x3aa   :  { %717 = vsyncpa [#allocation6], 1 }
 0x3ab   :  { %719 = vsyncpa [#allocation6 + $0x1], 1 }
 0x3ac   :  { %720 = vsyncpa [#allocation4], 1 }
 0x3ad   :  { %722 = vsyncpa [#allocation4 + $0x1], 1 }
 0x3ae   :  { %723 = vsyncpa [#allocation9], 1 }
 0x3af   :  { %725 = vsyncpa [#allocation9 + $0x1], 1 }

</bundles_post_ra>
